<compile_context>
chip_gen: v7x
topology: tpu7x:2x2x1
jax: 0.10.0
libtpu: 0.0.40
codegen_flags: <defaults>
</compile_context>

<pallas_src>
import jax
import jax.numpy as jnp
from jax.experimental import pallas as pl
from jax.experimental.pallas import tpu as pltpu

MIN_VALUE = -5.0
MAX_VALUE = 10.0
_LANES = 128


def _slab_kernel(x_ref, e_ref, o_ref):
    # x_ref: (block_rows, group*K), e_ref: (group*K, 128), o_ref: (block_rows, 128)
    # Single product per output element (plus exact zeros), accumulated in f32.
    acc = jnp.dot(x_ref[...], e_ref[...], preferred_element_type=jnp.float32)
    acc = jnp.maximum(acc, MIN_VALUE)   # clamp_min
    acc = jnp.minimum(acc, MAX_VALUE)   # clamp_max
    o_ref[...] = acc.astype(o_ref.dtype)


def _generic_kernel(x_ref, w_ref, o_ref):
    # Cold path: straightforward (block_m, K) @ (K, N) matmul + clamp.
    acc = jnp.dot(x_ref[...], w_ref[...], preferred_element_type=jnp.float32)
    acc = jnp.maximum(acc, MIN_VALUE)
    acc = jnp.minimum(acc, MAX_VALUE)
    o_ref[...] = acc.astype(o_ref.dtype)


def _round_up(x: int, mult: int) -> int:
    return ((x + mult - 1) // mult) * mult


def tensordot_clamp(x1: jax.Array, weight: jax.Array, *,
                    block_rows: int = 2048, block_m: int = 1024) -> jax.Array:
    """Pallas equivalent of: clamp_max(clamp_min(tensordot(x1, weight, dims=1), -5), 10)."""
    *batch_dims, k = x1.shape
    k_w, n = weight.shape
    assert k == k_w, f"contraction dim mismatch: {k} vs {k_w}"
    m = 1
    for d in batch_dims:
        m *= d
    x2d = x1.reshape(m, k)
    out_dtype = x1.dtype

    if n <= _LANES and _LANES % n == 0:
        # ---- lane-dense slab path (covers the module's (1, 8) weight) ----
        group = _LANES // n                       # logical rows packed per slab row (16 for n=8)
        slab_rows = pl.cdiv(m, group)
        br = min(block_rows, slab_rows)           # single full-extent block for small inputs
        num_blocks = pl.cdiv(slab_rows, br)
        slab_rows_pad = num_blocks * br           # even grid: pad instead of ragged tail
        m_pad = slab_rows_pad * group
        if m_pad != m:
            x2d = jnp.pad(x2d, ((0, m_pad - m), (0, 0)))   # zero rows -> clamp(0)=0, sliced off below
        x_slab = x2d.reshape(slab_rows_pad, group * k)

        # Folded expansion matrix E (group*K, 128), built once in the wrapper:
        #   E[j*K + kk, l] = weight[kk, l % n]  if l // n == j  else 0
        lane = jnp.arange(_LANES)
        sel = (lane[None, :] // n == jnp.arange(group)[:, None]).astype(weight.dtype)  # (group,128)
        w_lane = weight[:, lane % n]                                                    # (k,128)
        e_mat = (sel[:, None, :] * w_lane[None, :, :]).reshape(group * k, _LANES)

        out_slab = pl.pallas_call(
            _slab_kernel,
            out_shape=jax.ShapeDtypeStruct((slab_rows_pad, _LANES), out_dtype),
            grid=(num_blocks,),
            in_specs=[
                pl.BlockSpec((br, group * k), lambda i: (i, 0)),
                pl.BlockSpec((group * k, _LANES), lambda i: (0, 0)),
            ],
            out_specs=pl.BlockSpec((br, _LANES), lambda i: (i, 0)),
            compiler_params=pltpu.CompilerParams(
                dimension_semantics=("parallel",)),   # shards the M loop across v7x's 2 TCs
        )(x_slab, e_mat)

        out2d = out_slab.reshape(slab_rows_pad * group, n)[:m]
    else:
        # ---- generic cold path (n does not divide 128; unreachable for this module) ----
        # TODO(synk): this path keeps a lane-sparse (block_m, n) output; fine as a fallback only.
        bm = min(block_m, _round_up(m, 8))
        num_blocks = pl.cdiv(m, bm)
        m_pad = num_blocks * bm
        if m_pad != m:
            x2d = jnp.pad(x2d, ((0, m_pad - m), (0, 0)))
        out2d = pl.pallas_call(
            _generic_kernel,
            out_shape=jax.ShapeDtypeStruct((m_pad, n), out_dtype),
            grid=(num_blocks,),
            in_specs=[
                pl.BlockSpec((bm, k), lambda i: (i, 0)),
                pl.BlockSpec((k, n), lambda i: (0, 0)),
            ],
            out_specs=pl.BlockSpec((bm, n), lambda i: (i, 0)),
            compiler_params=pltpu.CompilerParams(
                dimension_semantics=("parallel",)),
        )(x2d, weight)[:m]

    return out2d.reshape(*batch_dims, n)


if __name__ == "__main__":
    key = jax.random.PRNGKey(0)
    kx, kw, kx2 = jax.random.split(key, 3)

    # Shapes consistent with the module's weight (1, 8): x1's last (contraction) dim is 1.
    B, S, K, N = 2, 16, 1, 8

    # Round test data to bf16-representable f32 values so the check is exact regardless
    # of how many MXU passes the f32 matmul uses (products of bf16-exact values are exact).
    def bf16_exact(a):
        return a.astype(jnp.bfloat16).astype(jnp.float32)

    x1 = bf16_exact(6.0 * jax.random.normal(kx, (B, S, K), dtype=jnp.float32))   # exercises both clamps
    weight = bf16_exact(jax.random.uniform(kw, (K, N), dtype=jnp.float32))       # torch.rand analog

    out = tensordot_clamp(x1, weight)
    jax.block_until_ready(out)
    ref = jnp.minimum(jnp.maximum(jnp.tensordot(x1, weight, axes=1), MIN_VALUE), MAX_VALUE)
    assert out.shape == (B, S, N), out.shape
    assert jnp.allclose(out, ref, atol=1e-6, rtol=1e-6)

    # Exercise the ragged-m, multi-block parallel path (padding + even pl.cdiv grid).
    B2, S2 = 3, 1000   # m = 3000: not a multiple of 16*block_rows
    x_big = bf16_exact(6.0 * jax.random.normal(kx2, (B2, S2, K), dtype=jnp.float32))
    out_big = tensordot_clamp(x_big, weight, block_rows=64)
    jax.block_until_ready(out_big)
    ref_big = jnp.minimum(jnp.maximum(jnp.tensordot(x_big, weight, axes=1), MIN_VALUE), MAX_VALUE)
    assert out_big.shape == (B2, S2, N), out_big.shape
    assert jnp.allclose(out_big, ref_big, atol=1e-6, rtol=1e-6)

    print("KERNEL_OK")
</pallas_src>

<mosaic_0001>
module attributes {stable_mosaic.version = 11 : i64} {
  func.func @_slab_kernel(%arg0: i32, %arg1: memref<2x16xf32, #tpu.memory_space<vmem>>, %arg2: memref<16x128xf32, #tpu.memory_space<vmem>>, %arg3: memref<2x128xf32, #tpu.memory_space<vmem>>) attributes {dimension_semantics = [#tpu.dimension_semantics<parallel>], iteration_bounds = array<i64: 1>, scalar_prefetch = 0 : i64, scratch_operands = 0 : i64, tpu.core_type = #tpu.core_type<tc>, window_params = [{transform_indices = @transform_0, window_bounds = array<i64: 2, 16>}, {pipeline_mode = #tpu.pipeline_mode<synchronous>, transform_indices = @transform_1, window_bounds = array<i64: 16, 128>}, {transform_indices = @transform_2, window_bounds = array<i64: 2, 128>}]} {
    %c0 = arith.constant 0 : index
    %c0_0 = arith.constant 0 : index
    %0 = vector.load %arg1[%c0, %c0_0] : memref<2x16xf32, #tpu.memory_space<vmem>>, vector<2x16xf32>
    %c0_1 = arith.constant 0 : index
    %c0_2 = arith.constant 0 : index
    %1 = vector.load %arg2[%c0_1, %c0_2] : memref<16x128xf32, #tpu.memory_space<vmem>>, vector<16x128xf32>
    %cst = arith.constant dense<0.000000e+00> : vector<2x128xf32>
    %2 = tpu.matmul %0, %1, %cst {dimension_numbers = #tpu.dot_dimension_numbers<[1], [0], [0], [1], [0, 0, 1, 1], [], []>} : vector<2x16xf32>, vector<16x128xf32>, vector<2x128xf32> -> vector<2x128xf32>
    %cst_3 = arith.constant -5.000000e+00 : f32
    %3 = vector.broadcast %cst_3 : f32 to vector<2x128xf32>
    %4 = arith.maximumf %2, %3 : vector<2x128xf32>
    %cst_4 = arith.constant 1.000000e+01 : f32
    %5 = vector.broadcast %cst_4 : f32 to vector<2x128xf32>
    %6 = arith.minimumf %4, %5 : vector<2x128xf32>
    %c0_5 = arith.constant 0 : index
    %c0_6 = arith.constant 0 : index
    %7 = vector.load %arg3[%c0_5, %c0_6] : memref<2x128xf32, #tpu.memory_space<vmem>>, vector<2x128xf32>
    tpu.vector_store %arg3[%c0_5, %c0_6], %6 {strides = array<i32>} : memref<2x128xf32, #tpu.memory_space<vmem>>, vector<2x128xf32>,
    return
  }
  func.func @transform_0(%arg0: i32) -> (i32, i32) {
    %c0_i32 = arith.constant 0 : i32
    %c0_i32_0 = arith.constant 0 : i32
    return %arg0, %c0_i32 : i32, i32
  }
  func.func @transform_1(%arg0: i32) -> (i32, i32) {
    %c0_i32 = arith.constant 0 : i32
    %c0_i32_0 = arith.constant 0 : i32
    %c0_i32_1 = arith.constant 0 : i32
    return %c0_i32, %c0_i32_0 : i32, i32
  }
  func.func @transform_2(%arg0: i32) -> (i32, i32) {
    %c0_i32 = arith.constant 0 : i32
    %c0_i32_0 = arith.constant 0 : i32
    return %arg0, %c0_i32 : i32, i32
  }
}

</mosaic_0001>

<bundles_post_ra>
// kernel: tpu_custom_call.1
= control target key start
LH: loop header
LB: loop body
LE: loop exit
PB: predicated region body
PF: predicated region fallthrough
CT: control target
= control target key end

     0   :  { %7 = vsyncpa [#allocation3], 0  ;;  %s294_s0 = inlined_call_operand.hbm [shape: f32[2,16], index: 0, kind: input, shape index: {}]   ;;  %s295_s1 = inlined_call_operand.hbm [shape: f32[16,128], index: 1, kind: input, shape index: {}]   ;;  %s296_s2 = inlined_call_operand.hbm [shape: f32[2,128], index: 2, kind: output, shape index: {}]  }
   0x1   :  { %8 = vsyncpa [#allocation6], 0 }
   0x2   :  { %9 = vsyncpa [#allocation4], 0  ;;  %s228_s9 = smov [#allocation2]   ;;  %s229_s11 = smov [#allocation5]  }
   0x3   :  { %s16_s10 = sshll.u32 %s228_s9, 4  ;;  %s25_s12 = sshll.u32 %s229_s11, 4  ;;  %s17_s10 = int_to_ptr.vmem [resolvable:$true] %s16_s10  ;;  %s251_s12 = int_to_ptr.vmem [resolvable:$true] %s25_s12 }
   0x4   :  { %s156_s15 = scalar_lea.hbm %s294_s0, 32 }
   0x5   :  { %p157_p0 = scmp.ne.s32.totalorder %s294_s0, %s156_s15  ;;  %p160_p1 = scmp.lt.u32.totalorder %s156_s15, %s294_s0 }
   0x7   :  { %p162_p2 = pnand %p160_p1, %p157_p0 }
   0x9   :  { %165 = shalt.err (!%p162_p2)
}
   0xa   :  { %s166_s20 = scalar_lea.vmem %s17_s10, 32  ;;  %p171_p4 = scmp.lt.s32.totalorder %s17_s10, %s17_s10 }
   0xb   :  { %p167_p3 = scmp.ne.s32.totalorder %s17_s10, %s166_s20  ;;  %p172_p5 = scmp.lt.s32.totalorder %s166_s20, %s166_s20 }
   0xd   :  { %p173_p6 = por %p172_p5, %p171_p4 }
   0xf   :  { %p174_p7 = pnand %p173_p6, %p167_p3 }
  0x11   :  { %177 = shalt.err (!%p174_p7)
}
  0x12   :  { %19 = dma.hbm_to_vmem [thread:$0]  %s294_s0, 32, %s17_s10, [#allocation3]  }
  0x13   :  { %s178_s25 = scalar_lea.hbm %s295_s1, 256 }
  0x14   :  { %p179_p8 = scmp.ne.s32.totalorder %s295_s1, %s178_s25  ;;  %p182_p9 = scmp.lt.u32.totalorder %s178_s25, %s295_s1 }
  0x16   :  { %p184_p10 = pnand %p182_p9, %p179_p8 }
  0x18   :  { %187 = shalt.err (!%p184_p10)
}
  0x19   :  { %s188_s30 = scalar_lea.vmem %s251_s12, 256  ;;  %p193_p12 = scmp.lt.s32.totalorder %s251_s12, %s251_s12 }
  0x1a   :  { %p189_p11 = scmp.ne.s32.totalorder %s251_s12, %s188_s30  ;;  %p194_p13 = scmp.lt.s32.totalorder %s188_s30, %s188_s30 }
  0x1c   :  { %p195_p0 = por %p194_p13, %p193_p12 }
  0x1e   :  { %p196_p1 = pnand %p195_p0, %p189_p11 }
  0x20   :  { %199 = shalt.err (!%p196_p1)
}
  0x21   :  { %s230_s0 = smov 128   ;;  %s231_s3 = smov 8  }
  0x22   :  { %31 = dma.hbm_to_vmem [thread:$0]  %s295_s1, 256, %s251_s12, [#allocation6], %s230_s0, %s230_s0, %s231_s3  }
  0x23   :  { %222 = dma.done.wait [#allocation3], 32  }
  0x24   :  { %223 = vsyncadd [#allocation3], 4294967264 }
  0x25   :  { %224 = dma.done.wait [#allocation6], 256  }
  0x26   :  { %225 = vsyncadd [#allocation6], 4294967040  ;;  %v232_v0 = vmov 0.0|0.0   ;;  %vm233_vm0 = vmmov 0   ;;  %v234_v1 = vmov 0.0   ;;  %v39_v2 = vld [vmem:[#allocation5] sm:$0xff] }
  0x27   :  { %145 = vmatprep.subr.bf16.mxu0 %v232_v0  ;;  %142 = vmatprep.mubr.msk.f32.mxu0 %vm233_vm0, %v234_v1  ;;  %v40_v3 = vld [vmem:[#allocation5 + $0x8] sm:$0xff]  ;;  %v38_v5 = vld [vmem:[#allocation2] sm:$0x3]  ;;  %vm41_vm1 = vcmask 130048   ;;  %s235_s6 = smov [#allocation7]  }
  0x28   :  { %v146_v4 = vpack.c.bf16 %v40_v3, %v39_v2  ;;  %s124_s7 = sshll.u32 %s235_s6, 4  ;;  %s125_s7 = int_to_ptr.vmem [resolvable:$true] %s124_s7 }
  0x29   :  { %s200_s1 = scalar_lea.vmem %s125_s7, 32  ;;  %p205_p3 = scmp.lt.s32.totalorder %s125_s7, %s125_s7 }
  0x2a   :  { %147 = vmatpush3.bf16.msra.mxu0 %v146_v4  ;;  %p201_p2 = scmp.ne.s32.totalorder %s125_s7, %s200_s1  ;;  %p206_p4 = scmp.lt.s32.totalorder %s200_s1, %s200_s1 }
  0x2c   :  { %p207_p5 = por %p206_p4, %p205_p3 }
  0x2d   :  { %143 = vmatmul.mubr.msk.f32.vlgmr.msra.gmra.mrb[0].mxu0 %vm41_vm1, %v38_v5 }
  0x2e   :  { %p208_p6 = pnand %p207_p5, %p201_p2 }
 0x100   :  { %v111_v6 = vpop.f32.mrb[0].mxu0 }
 0x101   :  { %v115_v7 = vmax.f32 %v111_v6, -5.0  ;;  %v144_v8 = vpop.f32.mrb[1].mxu0 }
 0x103   :  { %v116_v9 = vmin.f32 %v115_v7, 10.0 }
 0x105   :  { %117 = vst [vmem:[#allocation7] sm:$0x3] %v116_v9 }
 0x106   :  { %211 = shalt.err (!%p208_p6)
}
 0x107   :  { %s212_s10 = scalar_lea.hbm %s296_s2, 32 }
 0x108   :  { %p213_p7 = scmp.ne.s32.totalorder %s296_s2, %s212_s10  ;;  %p216_p8 = scmp.lt.u32.totalorder %s212_s10, %s296_s2 }
 0x10a   :  { %p218_p9 = pnand %p216_p8, %p213_p7 }
 0x10c   :  { %221 = shalt.err (!%p218_p9)
}
 0x10d   :  { %127 = dma.vmem_to_hbm [thread:$0]  %s125_s7, 32, %s296_s2, [#allocation4]  }
 0x10e   :  { %226 = dma.done.wait [#allocation4], 32  }
 0x10f   :  { %227 = vsyncadd [#allocation4], 4294967264 }
 0x110   :  { %131 = vsyncpa [#allocation3], 1 }
 0x111   :  { %132 = vsyncpa [#allocation6], 1 }
 0x112   :  { %133 = vsyncpa [#allocation4], 1 }

</bundles_post_ra>
